<compile_context>
chip_gen: v6e
topology: v6e:2x2x1
jax: 0.10.0
libtpu: 0.0.40
codegen_flags: <defaults>
</compile_context>

<pallas_src>
import jax
import jax.numpy as jnp
from jax.experimental import pallas as pl
from jax.experimental.pallas import tpu as pltpu


_LANES = (2048, 1024, 512, 256, 128)   # candidate lane-dense last dims
_TARGET_BLOCK_BYTES = 2 << 20          # ~2 MiB blocks (safe on v5e/v6e/v7x)


def _relu6_kernel(x_ref, o_ref):
    # clamp(x, 0, 6); weak-typed Python floats preserve the input dtype.
    o_ref[...] = jnp.minimum(jnp.maximum(x_ref[...], 0.0), 6.0)


def _pick_tile_r(rows, row_bytes):
    """Rows per block: multiple of 8 (or == rows), <= ~2 MiB, even block count."""
    max_tile = max(8, (_TARGET_BLOCK_BYTES // row_bytes) // 8 * 8)
    if rows <= max_tile:
        if rows % 16 == 0:
            return rows // 2      # two equal 8-aligned blocks -> v7x 2-TC split
        return rows               # single full-array block (legal for any rows)
    best = None
    for t in range(max_tile, 7, -8):      # divisor of rows, multiple of 8
        if rows % t == 0:
            if (rows // t) % 2 == 0:
                return t                  # even block count: balanced across TCs
            if best is None:
                best = t
    return best if best is not None else max_tile   # last resort: ragged tail


def _plan(total, itemsize):
    """Choose (lane, rows, tile_r) for a lane-dense (rows, lane) layout, or None."""
    best_score, best = None, None
    for lane in _LANES:
        if total % lane:
            continue
        rows = total // lane
        tile_r = _pick_tile_r(rows, lane * itemsize)
        nblocks = -(-rows // tile_r)
        ragged = (rows % tile_r) != 0
        if nblocks == 1:
            parity = 1
        elif nblocks % 2 == 0:
            parity = 0                    # even block count preferred (2-TC split)
        else:
            parity = 2
        score = (ragged, parity, -lane)
        if best_score is None or score < best_score:
            best_score, best = score, (lane, rows, tile_r)
    return best


@jax.jit
def relu6_pallas(x):
    """ReLU6 over an arbitrary-shaped float array (NCHW in the module)."""
    orig_shape = x.shape
    total = x.size
    itemsize = jnp.dtype(x.dtype).itemsize

    flat = x.reshape(-1)
    padded = total
    plan = _plan(total, itemsize)
    if plan is None:
        # Fallback only for sizes not divisible by 128 (costs one pad pass).
        padded = pl.cdiv(total, 128) * 128
        flat = jnp.pad(flat, (0, padded - total))
        plan = _plan(padded, itemsize)
    lane, rows, tile_r = plan
    x2 = flat.reshape(rows, lane)

    nblocks = pl.cdiv(rows, tile_r)
    nbytes = padded * itemsize

    out2 = pl.pallas_call(
        _relu6_kernel,
        out_shape=jax.ShapeDtypeStruct((rows, lane), x2.dtype),
        grid=(nblocks,),
        in_specs=[pl.BlockSpec((tile_r, lane), lambda i: (i, 0))],
        out_specs=pl.BlockSpec((tile_r, lane), lambda i: (i, 0)),
        compiler_params=pltpu.CompilerParams(
            dimension_semantics=("parallel",),
        ),
        cost_estimate=pl.CostEstimate(
            flops=2 * padded,
            transcendentals=0,
            bytes_accessed=2 * nbytes,
        ),
    )(x2)

    out_flat = out2.reshape(-1)
    if padded != total:
        out_flat = out_flat[:total]
    return out_flat.reshape(orig_shape)


if __name__ == "__main__":
    key = jax.random.PRNGKey(0)
    # Small NCHW input consistent with the module (original: [1, 96, 56, 56]).
    x = jax.random.normal(key, (2, 4, 16, 16), dtype=jnp.float32) * 4.0
    y = relu6_pallas(x)
    jax.block_until_ready(y)
    assert y.shape == x.shape and y.dtype == x.dtype
    assert jnp.allclose(y, jnp.clip(x, 0.0, 6.0)), "mismatch vs reference"

    # Ragged size (not divisible by 128) exercises the pad fallback path.
    x2 = jax.random.normal(jax.random.PRNGKey(1), (3, 5, 7, 11), dtype=jnp.float32) * 4.0
    y2 = relu6_pallas(x2)
    jax.block_until_ready(y2)
    assert jnp.allclose(y2, jnp.clip(x2, 0.0, 6.0)), "mismatch vs reference (ragged)"

    print("KERNEL_OK")
</pallas_src>

<mosaic_0001>
module attributes {stable_mosaic.version = 11 : i64} {
  func.func @_relu6_kernel(%arg0: i32, %arg1: memref<8x128xf32, #tpu.memory_space<vmem>>, %arg2: memref<8x128xf32, #tpu.memory_space<vmem>>) attributes {dimension_semantics = [#tpu.dimension_semantics<parallel>], iteration_bounds = array<i64: 2>, scalar_prefetch = 0 : i64, scratch_operands = 0 : i64, tpu.core_type = #tpu.core_type<tc>, window_params = [{transform_indices = @transform_0, window_bounds = array<i64: 8, 128>}, {transform_indices = @transform_1, window_bounds = array<i64: 8, 128>}]} {
    %c0 = arith.constant 0 : index
    %c0_0 = arith.constant 0 : index
    %0 = vector.load %arg1[%c0, %c0_0] : memref<8x128xf32, #tpu.memory_space<vmem>>, vector<8x128xf32>
    %cst = arith.constant 0.000000e+00 : f32
    %1 = vector.broadcast %cst : f32 to vector<8x128xf32>
    %2 = arith.maximumf %0, %1 : vector<8x128xf32>
    %cst_1 = arith.constant 6.000000e+00 : f32
    %3 = vector.broadcast %cst_1 : f32 to vector<8x128xf32>
    %4 = arith.minimumf %2, %3 : vector<8x128xf32>
    %c0_2 = arith.constant 0 : index
    %c0_3 = arith.constant 0 : index
    %5 = vector.load %arg2[%c0_2, %c0_3] : memref<8x128xf32, #tpu.memory_space<vmem>>, vector<8x128xf32>
    tpu.vector_store %arg2[%c0_2, %c0_3], %4 {strides = array<i32>} : memref<8x128xf32, #tpu.memory_space<vmem>>, vector<8x128xf32>,
    return
  }
  func.func @transform_0(%arg0: i32) -> (i32, i32) {
    %c0_i32 = arith.constant 0 : i32
    %c0_i32_0 = arith.constant 0 : i32
    return %arg0, %c0_i32 : i32, i32
  }
  func.func @transform_1(%arg0: i32) -> (i32, i32) {
    %c0_i32 = arith.constant 0 : i32
    %c0_i32_0 = arith.constant 0 : i32
    return %arg0, %c0_i32 : i32, i32
  }
}

</mosaic_0001>

<bundles_post_ra>
// kernel: relu6_pallas.1
= control target key start
LH: loop header
LB: loop body
LE: loop exit
PB: predicated region body
PF: predicated region fallthrough
CT: control target
= control target key end

     0   :  { %s190_s6 = smov 0   ;;  %s210_s0 = inlined_call_operand.vmem [shape: f32[16,128], index: 0, kind: input, shape index: {}]   ;;  %s211_s1 = inlined_call_operand.vmem [shape: f32[16,128], index: 1, kind: output, shape index: {}]  }
   0x1 LB: > { %s169_s7 = sadd.s32 4294967295, %s192_s6   ;;  %p173_p0 = scmp.ge.s32.totalorder %s192_s6, 1  ;;  %s192_s6 = sphi %s190_s6, %s11_s6  }
   0x2   : > { %p86_p1 = scmp.lt.s32.totalorder %s192_s6, 3 }
   0x4   : > { %p87_p2 = pnand %p173_p0, %p86_p1 }
   0x5   : > { %p104_p3 = scmp.lt.s32.totalorder (!%p87_p2), %s169_s7, 1 }
   0x6   : > { %90 = sbr.rel (%p87_p2) target bundleno = 20 (0x14), region = 24 }
   0xb   : > { %s213_s7 = smov (!%p104_p3, %s169_s7), 1 }
   0xc   : > { %s174_s8 = sshll.u32 %s213_s7, 3 }
   0xd   : > { %s107_s11 = scalar_lea.vmem %s210_s0, %s174_s8  ;;  %s111_s14 = scalar_lea.vmem %s211_s1, %s174_s8 }
   0xe   : > { %v112_v0 = vld [vmem:[%s107_s11] sm:$0xff] }
   0xf   : > { %v113_v1 = vmax.f32 %v112_v0, 0.0 }
  0x11   : > { %v114_v2 = vmin.f32 %v113_v1, 6.0 }
  0x13   : > { %115 = vst [vmem:[%s111_s14] sm:$0xff] %v114_v2 }
  0x14 PF: > { %s11_s6 = sadd.s32 1, %s192_s6  }
  0x15   : > { %p8_p4 = scmp.ge.s32.totalorder %s11_s6, 4  }
  0x17   :  { %10 = sbr.rel (!%p8_p4) target bundleno = 1 (0x1), region = 54 }

</bundles_post_ra>
